<compile_context>
chip_gen: v6e
topology: v6e:2x2x1
jax: 0.10.0
libtpu: 0.0.40
codegen_flags: <defaults>
</compile_context>

<pallas_src>
import jax
import jax.numpy as jnp
from jax.experimental import pallas as pl
from jax.experimental.pallas import tpu as pltpu


def _harmonic_kernel(p_ref, x_ref, out_ref):
    # p_ref:   (k, 2)       col 0 = spring constant (already squared), col 1 = mean
    # x_ref:   (k, TILE_N)  features; k on sublanes, batch n on lanes
    # out_ref: (1, TILE_N)  per-example energy (lane-dense store)
    k_spring = p_ref[:, 0:1]                    # (k, 1), lane-broadcast
    mean = p_ref[:, 1:2]                        # (k, 1)
    d = x_ref[...] - mean                       # VPU
    e = k_spring * (d * d)                      # VPU only
    # Reduce over k (sublanes) -> cheap cross-sublane reduce; stays lane-dense.
    out_ref[...] = jnp.sum(e, axis=0, keepdims=True) * 0.5


def harmonic_layer(in_feat, harmonic_parameters, *, tile_n=None):
    """in_feat: (n, k); harmonic_parameters: (2, k) with row 0 = sqrt(k_spring),
    row 1 = mean.  Returns (n, 1) energies (same dtype as in_feat)."""
    n, k = in_feat.shape
    x32 = in_feat.astype(jnp.float32)
    p32 = harmonic_parameters.astype(jnp.float32)

    # Resident parameter block: col 0 = spring constant (squared here once,
    # instead of per-tile inside the kernel), col 1 = mean.
    p_k2 = jnp.stack([p32[0, :] * p32[0, :], p32[1, :]], axis=1)   # (k, 2)

    # Pick a 128-aligned tile over the batch axis.  k sits on sublanes, so the
    # double-buffered VMEM cost of the x stream is ~ roundup(k,8)*tile_n*4*2 B.
    k_sub = ((k + 7) // 8) * 8
    if tile_n is None:
        budget = 4 * 1024 * 1024                       # ~4 MiB for the x stream
        tile_n = max(128, min(2048, budget // (k_sub * 4 * 2)))
    tile_n = max(128, (tile_n // 128) * 128)           # 128-aligned
    n_pad128 = ((n + 127) // 128) * 128
    tile_n = min(tile_n, n_pad128)
    n_pad = ((n + tile_n - 1) // tile_n) * tile_n

    # Batch on lanes: (n, k) -> (k, n_pad); finite zero padding on the tail.
    x_kn = jnp.pad(jnp.transpose(x32), ((0, 0), (0, n_pad - n)))

    out = pl.pallas_call(
        _harmonic_kernel,
        out_shape=jax.ShapeDtypeStruct((1, n_pad), jnp.float32),
        grid=(n_pad // tile_n,),
        in_specs=[
            pl.BlockSpec((k, 2), lambda i: (0, 0)),        # params: resident
            pl.BlockSpec((k, tile_n), lambda i: (0, i)),   # stream batch tiles
        ],
        out_specs=pl.BlockSpec((1, tile_n), lambda i: (0, i)),
        compiler_params=pltpu.CompilerParams(
            dimension_semantics=("parallel",)),            # megacore sharding
    )(p_k2, x_kn)

    # Drop padded columns, restore the module's (n, 1) convention and dtype.
    return out[0, :n].reshape(n, 1).astype(in_feat.dtype)


if __name__ == "__main__":
    key = jax.random.PRNGKey(0)
    n, k = 16, 8  # n examples, k harmonic (bond/angle) features

    # Deterministic "interaction_parameters": per-feature spring constant 'k'
    # and center 'mean', built in-script (synthetic, no checkpoint load).
    spring_consts = jnp.linspace(50.0, 120.0, k, dtype=jnp.float32)
    means = jnp.linspace(1.0, 2.0, k, dtype=jnp.float32)
    # Module stores [[sqrt(k)], [mean]] per feature, concatenated -> (2, k).
    harmonic_parameters = jnp.stack([jnp.sqrt(spring_consts), means], axis=0)

    # Input features (e.g. angles / bond lengths).
    in_feat = jax.random.uniform(key, (n, k), dtype=jnp.float32,
                                 minval=0.5, maxval=2.5)

    energy = harmonic_layer(in_feat, harmonic_parameters)
    energy = jax.block_until_ready(energy)

    # Reference in plain JAX (mirrors the PyTorch forward).
    ref = jnp.sum(harmonic_parameters[0, :] ** 2
                  * (in_feat - harmonic_parameters[1, :]) ** 2,
                  axis=1).reshape(n, 1) / 2

    assert energy.shape == (n, 1)
    assert jnp.allclose(energy, ref, rtol=1e-5, atol=1e-5)
    print("KERNEL_OK")
</pallas_src>

<mosaic_0001>
module attributes {stable_mosaic.version = 11 : i64} {
  func.func @_harmonic_kernel(%arg0: i32, %arg1: memref<8x2xf32, #tpu.memory_space<vmem>>, %arg2: memref<8x128xf32, #tpu.memory_space<vmem>>, %arg3: memref<1x128xf32, #tpu.memory_space<vmem>>) attributes {dimension_semantics = [#tpu.dimension_semantics<parallel>], iteration_bounds = array<i64: 1>, scalar_prefetch = 0 : i64, scratch_operands = 0 : i64, tpu.core_type = #tpu.core_type<tc>, window_params = [{pipeline_mode = #tpu.pipeline_mode<synchronous>, transform_indices = @transform_0, window_bounds = array<i64: 8, 2>}, {transform_indices = @transform_1, window_bounds = array<i64: 8, 128>}, {transform_indices = @transform_2, window_bounds = array<i64: 1, 128>}]} {
    %c0 = arith.constant 0 : index
    %c0_0 = arith.constant 0 : index
    %0 = vector.load %arg1[%c0, %c0_0] : memref<8x2xf32, #tpu.memory_space<vmem>>, vector<8x1xf32>
    %c0_1 = arith.constant 0 : index
    %c1 = arith.constant 1 : index
    %1 = vector.load %arg1[%c0_1, %c1] : memref<8x2xf32, #tpu.memory_space<vmem>>, vector<8x1xf32>
    %c0_2 = arith.constant 0 : index
    %c0_3 = arith.constant 0 : index
    %2 = vector.load %arg2[%c0_2, %c0_3] : memref<8x128xf32, #tpu.memory_space<vmem>>, vector<8x128xf32>
    %3 = vector.broadcast %1 : vector<8x1xf32> to vector<8x128xf32>
    %4 = arith.subf %2, %3 : vector<8x128xf32>
    %5 = arith.mulf %4, %4 : vector<8x128xf32>
    %6 = vector.broadcast %0 : vector<8x1xf32> to vector<8x128xf32>
    %7 = arith.mulf %6, %5 : vector<8x128xf32>
    %cst = arith.constant dense<0.000000e+00> : vector<128xf32>
    %8 = vector.multi_reduction <add>, %7, %cst [0] : vector<8x128xf32> to vector<128xf32>
    %9 = vector.shape_cast %8 : vector<128xf32> to vector<1x128xf32>
    %cst_4 = arith.constant 5.000000e-01 : f32
    %10 = vector.broadcast %cst_4 : f32 to vector<1x128xf32>
    %11 = arith.mulf %9, %10 : vector<1x128xf32>
    %c0_5 = arith.constant 0 : index
    %c0_6 = arith.constant 0 : index
    %12 = vector.load %arg3[%c0_5, %c0_6] : memref<1x128xf32, #tpu.memory_space<vmem>>, vector<1x128xf32>
    tpu.vector_store %arg3[%c0_5, %c0_6], %11 {strides = array<i32>} : memref<1x128xf32, #tpu.memory_space<vmem>>, vector<1x128xf32>,
    return
  }
  func.func @transform_0(%arg0: i32) -> (i32, i32) {
    %c0_i32 = arith.constant 0 : i32
    %c0_i32_0 = arith.constant 0 : i32
    %c0_i32_1 = arith.constant 0 : i32
    return %c0_i32, %c0_i32_0 : i32, i32
  }
  func.func @transform_1(%arg0: i32) -> (i32, i32) {
    %c0_i32 = arith.constant 0 : i32
    %c0_i32_0 = arith.constant 0 : i32
    return %c0_i32, %arg0 : i32, i32
  }
  func.func @transform_2(%arg0: i32) -> (i32, i32) {
    %c0_i32 = arith.constant 0 : i32
    %c0_i32_0 = arith.constant 0 : i32
    return %c0_i32, %arg0 : i32, i32
  }
}

</mosaic_0001>

<bundles_post_ra>
// kernel: tpu_custom_call.1
= control target key start
LH: loop header
LB: loop body
LE: loop exit
PB: predicated region body
PF: predicated region fallthrough
CT: control target
= control target key end

     0   :  { %s102_s0 = inlined_call_operand.vmem [shape: f32[8,2], index: 0, kind: input, shape index: {}]   ;;  %s103_s1 = inlined_call_operand.vmem [shape: f32[8,128], index: 1, kind: input, shape index: {}]   ;;  %s104_s2 = inlined_call_operand.hbm [shape: f32[1,128], index: 2, kind: output, shape index: {}]  }
   0x1   :  { %v12_v0 = vld [vmem:[%s102_s0] sm:$0xff] }
   0x2   :  { %7 = vsyncpa [#allocation3], 0  ;;  %v75_v1 = vmov 1   ;;  %v76_v2 = vmov 0   ;;  %v13_v3 = vld [vmem:[%s103_s1] sm:$0xff]  ;;  %s77_s0 = smov [#allocation2]  }
   0x3   :  { %51 = vset.pattern.permute.xlu0 %v75_v1  ;;  %s40_s13 = sshll.u32 %s77_s0, 4  ;;  %s41_s13 = int_to_ptr.vmem [resolvable:$true] %s40_s13 }
   0x4   :  { %16 = vperm.xlu0 %51, %v12_v0   ;;  %s53_s14 = scalar_lea.vmem %s41_s13, 16  ;;  %s57_s15 = scalar_lea.vmem %s41_s13, 32 }
   0x5   :  { %p54_p0 = scmp.ne.s32.totalorder %s41_s13, %s53_s14  ;;  %p58_p1 = scmp.lt.s32.totalorder %s41_s13, %s41_s13 }
   0x6   :  { %p59_p2 = scmp.lt.s32.totalorder %s57_s15, %s53_s14 }
   0x8   :  { %52 = vset.pattern.permute.xlu0 %v76_v2  ;;  %p60_p3 = por %p59_p2, %p58_p1 }
   0x9   :  { %22 = vperm.xlu0 %52, %v12_v0  }
   0xa   :  { %p61_p4 = pnand %p60_p3, %p54_p0 }
  0x7f   :  { %v17_v4 = vpop.permute.xlu0 %16 }
  0x80   :  { %v19_v5 = vsub.f32 %v13_v3, %v17_v4 }
  0x82   :  { %v20_v6 = vmul.f32 %v19_v5, %v19_v5 }
  0x84   :  { %v23_v7 = vpop.permute.xlu0 %22 }
  0x85   :  { %v25_v8 = vmul.f32 %v23_v7, %v20_v6 }
  0x87   :  { %v26_v9 = vrot.slane %v25_v8, 4 }
  0x89   :  { %v27_v10 = vadd.f32 %v26_v9, %v25_v8 }
  0x8b   :  { %v28_v11 = vrot.slane %v27_v10, 2 }
  0x8d   :  { %v29_v12 = vadd.f32 %v28_v11, %v27_v10 }
  0x8f   :  { %v30_v13 = vrot.slane %v29_v12, 1 }
  0x91   :  { %v31_v14 = vadd.f32 %v30_v13, %v29_v12 }
  0x93   :  { %v32_v15 = vmul.f32 0.5, %v31_v14 }
  0x95   :  { %33 = vst [vmem:[#allocation2] sm:$0x1] %v32_v15 }
  0x96   :  { %64 = shalt.err (!%p61_p4)
}
  0x97   :  { %43 = dma.vmem_to_hbm [thread:$0]  %s41_s13, 16, %s104_s2, [#allocation3]  }
  0x98   :  { %73 = dma.done.wait [#allocation3], 16  }
  0x99   :  { %74 = vsyncadd [#allocation3], 4294967280 }
  0x9a   :  { %47 = vsyncpa [#allocation3], 1 }

</bundles_post_ra>
